<compile_context>
chip_gen: v7x
topology: tpu7x:2x2x1
jax: 0.10.0
libtpu: 0.0.40
codegen_flags: <defaults>
</compile_context>

<pallas_src>
import functools
import math

import jax
import jax.numpy as jnp
from jax.experimental import pallas as pl
from jax.experimental.pallas import tpu as pltpu


# Original Fullyconneted layer sizes (3*224*224 -> 3000 -> 500 -> 20 -> 2).
FULL_DIMS = (3 * 224 * 224, 3000, 500, 20, 2)

# Upper bound on the bf16 dequant chunk produced per inner step (keeps Mosaic
# vector temporaries small and independent of the - much larger - DMA tile).
_DEQUANT_CHUNK_BYTES = 2 * 1024 * 1024


def _tpu_config():
    """Return (physical VMEM bytes per TensorCore, TensorCores per chip)."""
    try:
        kind = jax.devices()[0].device_kind.lower()
    except Exception:
        kind = ""
    if "v7" in kind:                       # v7x: 64 MiB VMEM per TC, 2 TCs/chip
        return 64 * 1024 * 1024, 2
    if "v6" in kind:                       # v6e: 128 MiB VMEM, 1 TC
        return 128 * 1024 * 1024, 1
    if "v5e" in kind or "lite" in kind:    # v5e: 128 MiB VMEM, 1 TC
        return 128 * 1024 * 1024, 1
    if "v4" in kind or "v5" in kind:       # v4 / v5p megacore: 128 MiB per core
        return 128 * 1024 * 1024, 2
    return 64 * 1024 * 1024, 1             # conservative default


_VMEM_BYTES, _NUM_TC = _tpu_config()


# ----------------------------------------------------------------------------
# Tile selection (generation aware)
# ----------------------------------------------------------------------------
def _pick_tk(K, tn, vmem_bytes):
    """Largest multiple-of-128 divisor of K whose double-buffered int8 weight
    tile stays within ~40% of physical VMEM."""
    cap = max(128, min(K, int(0.40 * vmem_bytes) // (2 * tn)))
    tk = 128
    for cand in range(128, cap + 1, 128):
        if K % cand == 0:
            tk = cand
    return tk


def _pick_col_chunk(tk, tn):
    """Lane-dim chunk for in-kernel dequant: bf16 chunk <= _DEQUANT_CHUNK_BYTES."""
    cap = max(128, min(tn, _DEQUANT_CHUNK_BYTES // (2 * tk)))
    sub = 128
    for cand in range(128, cap + 1, 128):
        if tn % cand == 0:
            sub = cand
    return tn // sub, sub


# ----------------------------------------------------------------------------
# fc1:  y = relu((x @ dequant(Wq)) * scale + bias)   -- HBM-bound weight stream
# ----------------------------------------------------------------------------
def _fc1_q8_kernel(x_ref, w_ref, sb_ref, o_ref, acc_ref, *,
                   n_sub, sub_n, apply_relu):
    k = pl.program_id(1)

    @pl.when(k == 0)
    def _():
        acc_ref[...] = jnp.zeros_like(acc_ref)

    x = x_ref[...]  # (M, tk) bf16, tiny (M=2), kept live across the inner loop

    def body(c, carry):
        c0 = pl.multiple_of(c * sub_n, sub_n)
        # Dequantize a lane-chunk of the int8 tile on the VPU (exact in bf16
        # since |q| <= 127), then MXU matmul with f32 accumulation.
        w_bf = w_ref[:, pl.ds(c0, sub_n)].astype(jnp.float32).astype(jnp.bfloat16)
        acc_ref[:, pl.ds(c0, sub_n)] += jnp.dot(
            x, w_bf, preferred_element_type=jnp.float32)
        return carry

    jax.lax.fori_loop(0, n_sub, body, 0)

    @pl.when(k == pl.num_programs(1) - 1)
    def _():
        # Per-column scale + bias (+ ReLU) epilogue; single lane-dense store.
        out = acc_ref[...] * sb_ref[0:1, :] + sb_ref[1:2, :]
        if apply_relu:
            out = jnp.maximum(out, 0.0)
        o_ref[...] = out


def linear_q8_pallas(x, wq, sb, *, relu=True):
    """y = [relu]((x @ Wq) * scale + bias).

    wq: (n_col_blocks, K, tn) int8, column-block-contiguous layout.
    sb: (2, N) f32 -- row 0 per-column scale, row 1 bias.  N = n_col_blocks*tn.
    """
    M = x.shape[0]
    n_blk, K, tn = wq.shape
    N = n_blk * tn
    assert K % 128 == 0 and tn % 128 == 0 and sb.shape == (2, N)

    if x.shape[1] != K:                       # zero-pad activations up to K
        x = jnp.pad(x, ((0, 0), (0, K - x.shape[1])))
    x = x.astype(jnp.bfloat16)                # hoisted cast (once, not per tile)

    tk = _pick_tk(K, tn, _VMEM_BYTES)
    n_sub, sub_n = _pick_col_chunk(tk, tn)
    grid = (n_blk, K // tk)

    w_db_bytes = 2 * tk * tn                  # double-buffered int8 weight tile
    vmem_limit = int(min(0.80 * _VMEM_BYTES,
                         max(32 * 1024 * 1024, w_db_bytes + 24 * 1024 * 1024)))

    cost = pl.CostEstimate(
        flops=2 * M * K * N,
        transcendentals=0,
        bytes_accessed=(n_blk * x.size * x.dtype.itemsize   # x re-read per j blk
                        + wq.size * wq.dtype.itemsize
                        + sb.size * sb.dtype.itemsize
                        + M * N * 4),
    )

    kernel = functools.partial(_fc1_q8_kernel, n_sub=n_sub, sub_n=sub_n,
                               apply_relu=relu)
    return pl.pallas_call(
        kernel,
        out_shape=jax.ShapeDtypeStruct((M, N), jnp.float32),
        grid_spec=pltpu.PrefetchScalarGridSpec(
            num_scalar_prefetch=0,
            grid=grid,
            in_specs=[
                pl.BlockSpec((M, tk), lambda j, k: (0, k)),            # x bf16
                pl.BlockSpec((None, tk, tn), lambda j, k: (j, k, 0)),  # Wq int8
                pl.BlockSpec((2, tn), lambda j, k: (0, j)),            # scale|bias
            ],
            out_specs=pl.BlockSpec((M, tn), lambda j, k: (0, j)),
            scratch_shapes=[pltpu.VMEM((M, tn), jnp.float32)],         # f32 acc
        ),
        compiler_params=pltpu.CompilerParams(
            # j ("parallel") lets v7x shard the two column blocks across its
            # TensorCores; on single-TC chips it is just a (size-1) loop.
            dimension_semantics=("parallel", "arbitrary"),
            vmem_limit_bytes=vmem_limit,
        ),
        cost_estimate=cost,
    )(x, wq, sb)


# ----------------------------------------------------------------------------
# Fused tail: fc2 -> ReLU -> fc3 -> ReLU -> fc4  (everything fits in VMEM)
# ----------------------------------------------------------------------------
def _tail_kernel(h_ref, w2_ref, b2_ref, w3_ref, b3_ref, w4_ref, b4_ref, o_ref):
    h = h_ref[...].astype(jnp.bfloat16)
    h = jnp.dot(h, w2_ref[...], preferred_element_type=jnp.float32) + b2_ref[...]
    h = jnp.maximum(h, 0.0)                           # fc2 -> ReLU (dp2 = id)
    h = jnp.dot(h.astype(jnp.bfloat16), w3_ref[...],
                preferred_element_type=jnp.float32) + b3_ref[...]
    h = jnp.maximum(h, 0.0)                           # fc3 -> ReLU
    h = jnp.dot(h.astype(jnp.bfloat16), w4_ref[...],
                preferred_element_type=jnp.float32) + b4_ref[...]
    o_ref[...] = h                                    # fc4: no activation


def fused_tail_pallas(h, tail_params):
    (w2, b2), (w3, b3), (w4, b4) = tail_params
    M = h.shape[0]
    n_out = w4.shape[1]
    return pl.pallas_call(
        _tail_kernel,
        out_shape=jax.ShapeDtypeStruct((M, n_out), jnp.float32),
        in_specs=[pl.BlockSpec(memory_space=pltpu.MemorySpace.VMEM)
                  for _ in range(7)],
        out_specs=pl.BlockSpec(memory_space=pltpu.MemorySpace.VMEM),
    )(h, w2, b2, w3, b3, w4, b4)


# ----------------------------------------------------------------------------
# Parameter init (PyTorch-Linear-style uniform bounds), padded / quantized
# ----------------------------------------------------------------------------
def _init_linear(key, in_f, out_f):
    kw, kb = jax.random.split(key)
    bound = 1.0 / math.sqrt(in_f)
    w = jax.random.uniform(kw, (in_f, out_f), jnp.float32, -bound, bound)
    b = jax.random.uniform(kb, (out_f,), jnp.float32, -bound, bound)
    return w, b


def _pad_to_multiple(a, mult=128):
    pads = [(0, (-d) % mult) for d in a.shape]
    return jnp.pad(a, pads)


def _prepare_fc1_int8(w, b):
    """Pad, per-column int8 quantize, and lay out column-block-contiguous."""
    wp = _pad_to_multiple(w)                          # (Kp, Np) f32
    bp = _pad_to_multiple(b)                          # (Np,)   f32
    Kp, Np = wp.shape
    amax = jnp.max(jnp.abs(wp), axis=0)
    scale = jnp.maximum(amax, 1e-12) / 127.0
    wq = jnp.clip(jnp.round(wp / scale[None, :]), -127, 127).astype(jnp.int8)
    sb = jnp.stack([scale, bp], axis=0).astype(jnp.float32)       # (2, Np)

    n_blk = _NUM_TC if (_NUM_TC > 1 and Np % (_NUM_TC * 128) == 0) else 1
    tn = Np // n_blk
    wq = wq.reshape(Kp, n_blk, tn).transpose(1, 0, 2)             # (n_blk,Kp,tn)
    return wq, sb


def make_params(key, dims):
    layer_io = list(zip(dims[:-1], dims[1:]))
    keys = jax.random.split(key, len(layer_io))
    params = []
    for idx, (k, (din, dout)) in enumerate(zip(keys, layer_io)):
        w, b = _init_linear(k, din, dout)
        if idx == 0:
            params.append(_prepare_fc1_int8(w, b))                # fc1: int8
        else:
            params.append((_pad_to_multiple(w).astype(jnp.bfloat16),
                           _pad_to_multiple(b).reshape(1, -1)))   # tail: bf16
    return params


# ----------------------------------------------------------------------------
# Forward pass (matches Fullyconneted.forward; dropouts are eval-mode identity)
# ----------------------------------------------------------------------------
@functools.partial(jax.jit, static_argnames=("n_out",))
def fullyconneted_forward(x, params, n_out=2):
    B = x.shape[0]
    h = x.reshape(B, -1)                              # x.view(B, -1)
    wq1, sb1 = params[0]
    h = linear_q8_pallas(h, wq1, sb1, relu=True)      # fc1 -> ReLU (dp1 = id)
    h = fused_tail_pallas(h, params[1:])              # fc2->ReLU, fc3->ReLU, fc4
    return h[:, :n_out]                               # strip N padding


# Pure-JAX reference mirroring the kernel's precision strategy (bf16 operands,
# f32 accumulation) for a correctness check.
def reference_forward(x, params, n_out):
    B = x.shape[0]
    h = x.reshape(B, -1)
    wq, sb = params[0]
    n_blk, K, tn = wq.shape
    w1 = jnp.transpose(wq, (1, 0, 2)).reshape(K, n_blk * tn)
    h = jnp.pad(h, ((0, 0), (0, K - h.shape[1])))

    def mm(a, w):
        return jnp.dot(a.astype(jnp.bfloat16), w.astype(jnp.bfloat16),
                       preferred_element_type=jnp.float32)

    h = jnp.maximum(mm(h, w1) * sb[0:1, :] + sb[1:2, :], 0.0)
    (w2, b2), (w3, b3), (w4, b4) = params[1:]
    h = jnp.maximum(mm(h, w2) + b2, 0.0)
    h = jnp.maximum(mm(h, w3) + b3, 0.0)
    h = mm(h, w4) + b4
    return h[:, :n_out]


if __name__ == "__main__":
    # Small, module-consistent test shapes (real model: FULL_DIMS with 3x224x224
    # input; identical code path, just bigger K/N and more K tiles).
    B, C, H, W = 2, 3, 16, 16
    dims = (C * H * W, 256, 128, 32, 2)

    key = jax.random.PRNGKey(0)
    k_x, k_p = jax.random.split(key)
    x = jax.random.normal(k_x, (B, C, H, W), jnp.float32)
    params = make_params(k_p, dims)

    out = fullyconneted_forward(x, params, n_out=dims[-1])
    jax.block_until_ready(out)

    ref = reference_forward(x, params, n_out=dims[-1])
    assert out.shape == (B, dims[-1]) and out.dtype == jnp.float32
    assert jnp.allclose(out, ref, rtol=1e-2, atol=1e-2), (
        "max abs diff = %f" % float(jnp.max(jnp.abs(out - ref))))
    print("KERNEL_OK")
</pallas_src>

<mosaic_0001>
module attributes {stable_mosaic.version = 11 : i64} {
  func.func @_tail_kernel(%arg0: memref<2x256xf32, #tpu.memory_space<vmem>>, %arg1: memref<256x128xbf16, #tpu.memory_space<vmem>>, %arg2: memref<1x128xf32, #tpu.memory_space<vmem>>, %arg3: memref<128x128xbf16, #tpu.memory_space<vmem>>, %arg4: memref<1x128xf32, #tpu.memory_space<vmem>>, %arg5: memref<128x128xbf16, #tpu.memory_space<vmem>>, %arg6: memref<1x128xf32, #tpu.memory_space<vmem>>, %arg7: memref<2x128xf32, #tpu.memory_space<vmem>>) attributes {dimension_semantics = [], scalar_prefetch = 0 : i64, scratch_operands = 0 : i64, tpu.core_type = #tpu.core_type<tc>} {
    %c0 = arith.constant 0 : index
    %c0_0 = arith.constant 0 : index
    %0 = vector.load %arg0[%c0, %c0_0] : memref<2x256xf32, #tpu.memory_space<vmem>>, vector<2x256xf32>
    %1 = arith.truncf %0 : vector<2x256xf32> to vector<2x256xbf16>
    %c0_1 = arith.constant 0 : index
    %c0_2 = arith.constant 0 : index
    %2 = vector.load %arg1[%c0_1, %c0_2] : memref<256x128xbf16, #tpu.memory_space<vmem>>, vector<256x128xbf16>
    %cst = arith.constant dense<0.000000e+00> : vector<2x128xf32>
    %3 = tpu.matmul %1, %2, %cst {dimension_numbers = #tpu.dot_dimension_numbers<[1], [0], [0], [1], [0, 0, 1, 1], [], []>} : vector<2x256xbf16>, vector<256x128xbf16>, vector<2x128xf32> -> vector<2x128xf32>
    %c0_3 = arith.constant 0 : index
    %c0_4 = arith.constant 0 : index
    %4 = vector.load %arg2[%c0_3, %c0_4] : memref<1x128xf32, #tpu.memory_space<vmem>>, vector<1x128xf32>
    %5 = vector.broadcast %4 : vector<1x128xf32> to vector<2x128xf32>
    %6 = arith.addf %3, %5 : vector<2x128xf32>
    %cst_5 = arith.constant 0.000000e+00 : f32
    %7 = vector.broadcast %cst_5 : f32 to vector<2x128xf32>
    %8 = arith.maximumf %6, %7 : vector<2x128xf32>
    %9 = arith.truncf %8 : vector<2x128xf32> to vector<2x128xbf16>
    %c0_6 = arith.constant 0 : index
    %c0_7 = arith.constant 0 : index
    %10 = vector.load %arg3[%c0_6, %c0_7] : memref<128x128xbf16, #tpu.memory_space<vmem>>, vector<128x128xbf16>
    %cst_8 = arith.constant dense<0.000000e+00> : vector<2x128xf32>
    %11 = tpu.matmul %9, %10, %cst_8 {dimension_numbers = #tpu.dot_dimension_numbers<[1], [0], [0], [1], [0, 0, 1, 1], [], []>} : vector<2x128xbf16>, vector<128x128xbf16>, vector<2x128xf32> -> vector<2x128xf32>
    %c0_9 = arith.constant 0 : index
    %c0_10 = arith.constant 0 : index
    %12 = vector.load %arg4[%c0_9, %c0_10] : memref<1x128xf32, #tpu.memory_space<vmem>>, vector<1x128xf32>
    %13 = vector.broadcast %12 : vector<1x128xf32> to vector<2x128xf32>
    %14 = arith.addf %11, %13 : vector<2x128xf32>
    %cst_11 = arith.constant 0.000000e+00 : f32
    %15 = vector.broadcast %cst_11 : f32 to vector<2x128xf32>
    %16 = arith.maximumf %14, %15 : vector<2x128xf32>
    %17 = arith.truncf %16 : vector<2x128xf32> to vector<2x128xbf16>
    %c0_12 = arith.constant 0 : index
    %c0_13 = arith.constant 0 : index
    %18 = vector.load %arg5[%c0_12, %c0_13] : memref<128x128xbf16, #tpu.memory_space<vmem>>, vector<128x128xbf16>
    %cst_14 = arith.constant dense<0.000000e+00> : vector<2x128xf32>
    %19 = tpu.matmul %17, %18, %cst_14 {dimension_numbers = #tpu.dot_dimension_numbers<[1], [0], [0], [1], [0, 0, 1, 1], [], []>} : vector<2x128xbf16>, vector<128x128xbf16>, vector<2x128xf32> -> vector<2x128xf32>
    %c0_15 = arith.constant 0 : index
    %c0_16 = arith.constant 0 : index
    %20 = vector.load %arg6[%c0_15, %c0_16] : memref<1x128xf32, #tpu.memory_space<vmem>>, vector<1x128xf32>
    %21 = vector.broadcast %20 : vector<1x128xf32> to vector<2x128xf32>
    %22 = arith.addf %19, %21 : vector<2x128xf32>
    %c0_17 = arith.constant 0 : index
    %c0_18 = arith.constant 0 : index
    %23 = vector.load %arg7[%c0_17, %c0_18] : memref<2x128xf32, #tpu.memory_space<vmem>>, vector<2x128xf32>
    tpu.vector_store %arg7[%c0_17, %c0_18], %22 {strides = array<i32>} : memref<2x128xf32, #tpu.memory_space<vmem>>, vector<2x128xf32>,
    return
  }
}

module attributes {stable_mosaic.version = 11 : i64} {
  func.func @_fc1_q8_kernel(%arg0: i32, %arg1: i32, %arg2: memref<2x768xbf16, #tpu.memory_space<vmem>>, %arg3: memref<1x768x256xi8, #tpu.memory_space<vmem>>, %arg4: memref<2x256xf32, #tpu.memory_space<vmem>>, %arg5: memref<2x256xf32, #tpu.memory_space<vmem>>, %arg6: memref<2x256xf32, #tpu.memory_space<vmem>>) attributes {dimension_semantics = [#tpu.dimension_semantics<parallel>, #tpu.dimension_semantics<arbitrary>], iteration_bounds = array<i64: 1, 1>, scalar_prefetch = 0 : i64, scratch_operands = 1 : i64, tpu.core_type = #tpu.core_type<tc>, window_params = [{transform_indices = @transform_0, window_bounds = array<i64: 2, 768>}, {transform_indices = @transform_1, window_bounds = array<i64: 1, 768, 256>}, {transform_indices = @transform_2, window_bounds = array<i64: 2, 256>}, {transform_indices = @transform_3, window_bounds = array<i64: 2, 256>}]} {
    %c0_i32 = arith.constant 0 : i32
    %0 = arith.cmpi eq, %arg1, %c0_i32 : i32
    %1 = arith.extui %0 : i1 to i32
    %c0_i32_0 = arith.constant 0 : i32
    %2 = arith.cmpi ne, %1, %c0_i32_0 : i32
    scf.if %2 {
      %cst_9 = arith.constant 0.000000e+00 : f32
      %20 = vector.broadcast %cst_9 : f32 to vector<2x256xf32>
      %c0_10 = arith.constant 0 : index
      %c0_11 = arith.constant 0 : index
      %21 = vector.load %arg6[%c0_10, %c0_11] : memref<2x256xf32, #tpu.memory_space<vmem>>, vector<2x256xf32>
      tpu.vector_store %arg6[%c0_10, %c0_11], %20 {strides = array<i32>} : memref<2x256xf32, #tpu.memory_space<vmem>>, vector<2x256xf32>,
    } else {
    }
    %c0 = arith.constant 0 : index
    %c0_1 = arith.constant 0 : index
    %3 = vector.load %arg2[%c0, %c0_1] : memref<2x768xbf16, #tpu.memory_space<vmem>>, vector<2x768xbf16>
    %c0_i32_2 = arith.constant 0 : i32
    %c256_i32 = arith.constant 256 : i32
    %4 = arith.muli %c0_i32_2, %c256_i32 : i32
    %5 = tpu.assume_multiple %4, 256 : i32
    %c0_3 = arith.constant 0 : index
    %c0_4 = arith.constant 0 : index
    %6 = arith.index_cast %5 : i32 to index
    %7 = vector.load %arg3[%c0_3, %c0_4, %6] : memref<1x768x256xi8, #tpu.memory_space<vmem>>, vector<1x768x256xi8>
    %8 = vector.shape_cast %7 : vector<1x768x256xi8> to vector<768x256xi8>
    %9 = arith.sitofp %8 : vector<768x256xi8> to vector<768x256xf32>
    %10 = arith.truncf %9 : vector<768x256xf32> to vector<768x256xbf16>
    %c0_5 = arith.constant 0 : index
    %11 = arith.index_cast %5 : i32 to index
    %12 = vector.load %arg6[%c0_5, %11] : memref<2x256xf32, #tpu.memory_space<vmem>>, vector<2x256xf32>
    %cst = arith.constant dense<0.000000e+00> : vector<2x256xf32>
    %13 = tpu.matmul %3, %10, %cst {dimension_numbers = #tpu.dot_dimension_numbers<[1], [0], [0], [1], [0, 0, 1, 1], [], []>} : vector<2x768xbf16>, vector<768x256xbf16>, vector<2x256xf32> -> vector<2x256xf32>
    %14 = arith.addf %12, %13 : vector<2x256xf32>
    %c0_6 = arith.constant 0 : index
    %15 = arith.index_cast %5 : i32 to index
    %16 = vector.load %arg6[%c0_6, %15] : memref<2x256xf32, #tpu.memory_space<vmem>>, vector<2x256xf32>
    tpu.vector_store %arg6[%c0_6, %15], %14 {strides = array<i32>} : memref<2x256xf32, #tpu.memory_space<vmem>>, vector<2x256xf32>,
    %c1_i32 = arith.constant 1 : i32
    %c0_i32_7 = arith.constant 0 : i32
    %17 = arith.cmpi eq, %arg1, %c0_i32_7 : i32
    %18 = arith.extui %17 : i1 to i32
    %c0_i32_8 = arith.constant 0 : i32
    %19 = arith.cmpi ne, %18, %c0_i32_8 : i32
    scf.if %19 {
      %c0_9 = arith.constant 0 : index
      %c0_10 = arith.constant 0 : index
      %20 = vector.load %arg6[%c0_9, %c0_10] : memref<2x256xf32, #tpu.memory_space<vmem>>, vector<2x256xf32>
      %c0_11 = arith.constant 0 : index
      %c0_12 = arith.constant 0 : index
      %21 = vector.load %arg4[%c0_11, %c0_12] : memref<2x256xf32, #tpu.memory_space<vmem>>, vector<1x256xf32>
      %22 = vector.broadcast %21 : vector<1x256xf32> to vector<2x256xf32>
      %23 = arith.mulf %20, %22 : vector<2x256xf32>
      %c1 = arith.constant 1 : index
      %c0_13 = arith.constant 0 : index
      %24 = vector.load %arg4[%c1, %c0_13] : memref<2x256xf32, #tpu.memory_space<vmem>>, vector<1x256xf32>
      %25 = vector.broadcast %24 : vector<1x256xf32> to vector<2x256xf32>
      %26 = arith.addf %23, %25 : vector<2x256xf32>
      %cst_14 = arith.constant 0.000000e+00 : f32
      %27 = vector.broadcast %cst_14 : f32 to vector<2x256xf32>
      %28 = arith.maximumf %26, %27 : vector<2x256xf32>
      %c0_15 = arith.constant 0 : index
      %c0_16 = arith.constant 0 : index
      %29 = vector.load %arg5[%c0_15, %c0_16] : memref<2x256xf32, #tpu.memory_space<vmem>>, vector<2x256xf32>
      tpu.vector_store %arg5[%c0_15, %c0_16], %28 {strides = array<i32>} : memref<2x256xf32, #tpu.memory_space<vmem>>, vector<2x256xf32>,
    } else {
    }
    return
  }
  func.func @transform_0(%arg0: i32, %arg1: i32) -> (i32, i32) {
    %c0_i32 = arith.constant 0 : i32
    %c0_i32_0 = arith.constant 0 : i32
    return %c0_i32, %arg1 : i32, i32
  }
  func.func @transform_1(%arg0: i32, %arg1: i32) -> (i32, i32, i32) {
    %c0_i32 = arith.constant 0 : i32
    %c0_i32_0 = arith.constant 0 : i32
    return %arg0, %arg1, %c0_i32 : i32, i32, i32
  }
  func.func @transform_2(%arg0: i32, %arg1: i32) -> (i32, i32) {
    %c0_i32 = arith.constant 0 : i32
    %c0_i32_0 = arith.constant 0 : i32
    return %c0_i32, %arg0 : i32, i32
  }
  func.func @transform_3(%arg0: i32, %arg1: i32) -> (i32, i32) {
    %c0_i32 = arith.constant 0 : i32
    %c0_i32_0 = arith.constant 0 : i32
    return %c0_i32, %arg0 : i32, i32
  }
}

</mosaic_0001>

<bundles_post_ra>
// kernel: fullyconneted_forward.3
= control target key start
LH: loop header
LB: loop body
LE: loop exit
PB: predicated region body
PF: predicated region fallthrough
CT: control target
= control target key end

     0   :  { %v633_v2 = vmov 0.0   ;;  %s814_s0 = inlined_call_operand.vmem [shape: f32[2,256], index: 0, kind: input, shape index: {}]   ;;  %s815_s1 = inlined_call_operand.vmem [shape: bf16[256,128], index: 1, kind: input, shape index: {}]   ;;  %s816_s2 = inlined_call_operand.vmem [shape: f32[1,128], index: 2, kind: input, shape index: {}]   ;;  %s817_s3 = inlined_call_operand.vmem [shape: bf16[128,128], index: 3, kind: input, shape index: {}]   ;;  %s818_s4 = inlined_call_operand.vmem [shape: f32[1,128], index: 4, kind: input, shape index: {}]   ;;  %s819_s5 = inlined_call_operand.vmem [shape: bf16[128,128], index: 5, kind: input, shape index: {}]   ;;  %s820_s6 = inlined_call_operand.vmem [shape: f32[1,128], index: 6, kind: input, shape index: {}]   ;;  %s821_s7 = inlined_call_operand.hbm [shape: f32[2,128], index: 7, kind: output, shape index: {}]  }
   0x1   :  { %v577_v0 = vld [vmem:[%s815_s1 + $0x40] sm:$0xff]   ;;  %534 = vmatprep.subr.bf16.mxu1 %v633_v2  ;;  %v579_v3 = vld [vmem:[%s815_s1 + $0x48] sm:$0xff]   ;;  %v581_v5 = vld [vmem:[%s815_s1 + $0x50] sm:$0xff]  }
   0x2   :  { %v578_v1 = vld [vmem:[%s815_s1] sm:$0xff]   ;;  %494 = vmatprep.subr.bf16.mxu0 %v577_v0  ;;  %v580_v4 = vld [vmem:[%s815_s1 + $0x8] sm:$0xff]   ;;  %v582_v6 = vld [vmem:[%s815_s1 + $0x10] sm:$0xff]  }
   0x3   :  { %495 = vmatpush3.bf16.msra.mxu0 %v578_v1  ;;  %v583_v7 = vld [vmem:[%s815_s1 + $0x58] sm:$0xff]   ;;  %v585_v9 = vld [vmem:[%s815_s1 + $0x60] sm:$0xff]   ;;  %v587_v11 = vld [vmem:[%s815_s1 + $0x68] sm:$0xff]  }
   0x4   :  { %496 = vmatprep.subr.bf16.mxu0 %v579_v3  ;;  %v584_v8 = vld [vmem:[%s815_s1 + $0x18] sm:$0xff]   ;;  %v586_v10 = vld [vmem:[%s815_s1 + $0x20] sm:$0xff]   ;;  %v588_v15 = vld [vmem:[%s815_s1 + $0x28] sm:$0xff]  }
   0x5   :  { %v458_v12 = vld.sshfl [vmem:[%s814_s0] sm:$0x33 pattern:$0x76325410]  ;;  %v594_v17 = vld [vmem:[%s817_s3 + $0x8] sm:$0xff]   ;;  %v589_v18 = vld [vmem:[%s815_s1 + $0x70] sm:$0xff]  }
   0x6   :  { %v37_v13 = vcombine.high %v458_v12, %v458_v12  ;;  %v593_v14 = vld [vmem:[%s817_s3] sm:$0xff]   ;;  %v590_v19 = vld [vmem:[%s815_s1 + $0x30] sm:$0xff]   ;;  %v591_v20 = vld [vmem:[%s815_s1 + $0x78] sm:$0xff]  }
   0x7   :  { %497 = vmatpush3.bf16.msra.mxu0 %v580_v4  ;;  %535 = vmatpush3.bf16.msra.mxu1 %v593_v14  ;;  %v595_v21 = vld [vmem:[%s817_s3 + $0x10] sm:$0xff]   ;;  %v592_v22 = vld [vmem:[%s815_s1 + $0x38] sm:$0xff]  }
   0x8   :  { %498 = vmatprep.subr.bf16.mxu0 %v581_v5  ;;  %v41_v16 = vpack.c.bf16 %v37_v13, %v37_v13  ;;  %536 = vmatprep.subr.bf16.mxu1 %v633_v2  ;;  %v596_v23 = vld [vmem:[%s817_s3 + $0x18] sm:$0xff]  }
   0xa   :  { %209 = vmatprep.mubr.bf16.mxu0 %v41_v16 }
   0xb   :  { %499 = vmatpush3.bf16.msra.mxu0 %v582_v6  ;;  %537 = vmatpush3.bf16.msra.mxu1 %v594_v17 }
   0xc   :  { %500 = vmatprep.subr.bf16.mxu0 %v583_v7  ;;  %538 = vmatprep.subr.bf16.mxu1 %v633_v2 }
   0xf   :  { %501 = vmatpush3.bf16.msra.mxu0 %v584_v8  ;;  %539 = vmatpush3.bf16.msra.mxu1 %v595_v21 }
  0x10   :  { %502 = vmatprep.subr.bf16.mxu0 %v585_v9  ;;  %540 = vmatprep.subr.bf16.mxu1 %v633_v2 }
  0x13   :  { %503 = vmatpush3.bf16.msra.mxu0 %v586_v10 }
  0x14   :  { %504 = vmatprep.subr.bf16.mxu0 %v587_v11 }
  0x17   :  { %505 = vmatpush3.bf16.msra.mxu0 %v588_v15 }
  0x18   :  { %506 = vmatprep.subr.bf16.mxu0 %v589_v18 }
  0x1b   :  { %507 = vmatpush3.bf16.msra.mxu0 %v590_v19 }
  0x1c   :  { %508 = vmatprep.subr.bf16.mxu0 %v591_v20 }
  0x1d   :  { %12 = vsyncpa [#allocation3], 0  ;;  %v40_v24 = vpack.c.bf16 %v458_v12, %v458_v12  ;;  %541 = vmatpush3.bf16.msra.mxu1 %v596_v23  ;;  %v597_v25 = vld [vmem:[%s817_s3 + $0x20] sm:$0xff]   ;;  %v598_v26 = vld [vmem:[%s817_s3 + $0x28] sm:$0xff]   ;;  %vm634_vm0 = vmmov 0   ;;  %s635_s21 = smov [#allocation2]  }
  0x1e   :  { %542 = vmatprep.subr.bf16.mxu1 %v633_v2  ;;  %v599_v27 = vld [vmem:[%s817_s3 + $0x30] sm:$0xff]   ;;  %v600_v28 = vld [vmem:[%s817_s3 + $0x38] sm:$0xff]   ;;  %550 = vmatprep.mubr.msk.bf16.mxu1 %vm634_vm0, %v633_v2  ;;  %v601_v29 = vld [vmem:[%s819_s5] sm:$0xff]   ;;  %s450_s22 = sshll.u32 %s635_s21, 4  ;;  %s451_s22 = int_to_ptr.vmem [resolvable:$true] %s450_s22 }
  0x1f   :  { %509 = vmatpush3.bf16.msra.mxu0 %v592_v22  ;;  %v602_v30 = vld [vmem:[%s819_s5 + $0x8] sm:$0xff]   ;;  %v603_v31 = vld [vmem:[%s819_s5 + $0x10] sm:$0xff]   ;;  %v604_v32 = vld [vmem:[%s819_s5 + $0x18] sm:$0xff]   ;;  %p614_p1 = scmp.lt.s32.totalorder %s451_s22, %s451_s22 }
  0x20   :  { %554 = vmatprep.subr.bf16.mxu0 %v633_v2  ;;  %v605_v33 = vld [vmem:[%s819_s5 + $0x20] sm:$0xff]   ;;  %v606_v34 = vld [vmem:[%s819_s5 + $0x28] sm:$0xff]   ;;  %v607_v44 = vld [vmem:[%s819_s5 + $0x30] sm:$0xff]  }
  0x21   :  { %543 = vmatpush3.bf16.msra.mxu1 %v597_v25  ;;  %v459_v36 = vld [vmem:[%s816_s2] ss:$0 sm:$0xff]  ;;  %v608_v45 = vld [vmem:[%s819_s5 + $0x38] sm:$0xff]  }
  0x22   :  { %210 = vmatmul.mubr.bf16.vlgmr.msra.gmra.mrb[0].mxu0 %v40_v24  ;;  %544 = vmatprep.subr.bf16.mxu1 %v633_v2  ;;  %v476_v46 = vld [vmem:[%s818_s4] ss:$0 sm:$0xff]  ;;  %s609_s4 = scalar_lea.vmem %s451_s22, 32 }
  0x23   :  { %570 = vmatprep.mubr.msk.bf16.mxu0 %vm634_vm0, %v633_v2  ;;  %555 = vmatpush3.bf16.msra.mxu0 %v601_v29  ;;  %v485_v54 = vld [vmem:[%s820_s6] ss:$0 sm:$0xff]  ;;  %p610_p0 = scmp.ne.s32.totalorder %s451_s22, %s609_s4  ;;  %p615_p2 = scmp.lt.s32.totalorder %s609_s4, %s609_s4 }
  0x24   :  { %556 = vmatprep.subr.bf16.mxu0 %v633_v2 }
  0x25   :  { %545 = vmatpush3.bf16.msra.mxu1 %v598_v26  ;;  %p616_p3 = por %p615_p2, %p614_p1 }
  0x26   :  { %546 = vmatprep.subr.bf16.mxu1 %v633_v2 }
  0x27   :  { %557 = vmatpush3.bf16.msra.mxu0 %v602_v30  ;;  %p617_p4 = pnand %p616_p3, %p610_p0 }
  0x28   :  { %558 = vmatprep.subr.bf16.mxu0 %v633_v2 }
  0x29   :  { %547 = vmatpush3.bf16.msra.mxu1 %v599_v27 }
  0x2a   :  { %548 = vmatprep.subr.bf16.mxu1 %v633_v2 }
  0x2b   :  { %559 = vmatpush3.bf16.msra.mxu0 %v603_v31 }
  0x2c   :  { %560 = vmatprep.subr.bf16.mxu0 %v633_v2 }
  0x2d   :  { %549 = vmatpush3.bf16.msra.mxu1 %v600_v28 }
  0x2f   :  { %561 = vmatpush3.bf16.msra.mxu0 %v604_v32 }
  0x30   :  { %562 = vmatprep.subr.bf16.mxu0 %v633_v2 }
  0x33   :  { %563 = vmatpush3.bf16.msra.mxu0 %v605_v33 }
  0x34   :  { %564 = vmatprep.subr.bf16.mxu0 %v633_v2 }
  0x37   :  { %565 = vmatpush3.bf16.msra.mxu0 %v606_v34 }
  0x38   :  { %566 = vmatprep.subr.bf16.mxu0 %v633_v2 }
  0x3b   :  { %567 = vmatpush3.bf16.msra.mxu0 %v607_v44 }
  0x3c   :  { %568 = vmatprep.subr.bf16.mxu0 %v633_v2 }
  0x3f   :  { %569 = vmatpush3.bf16.msra.mxu0 %v608_v45 }
  0xf5   :  { %v510_v35 = vpop.f32.mrb[0].mxu0 }
  0xf6   :  { %v511_v37 = vpop.f32.mrb[1].mxu0 }
  0xf7   :  { %v512_v38 = vadd.f32 %v511_v37, %v510_v35  ;;  %v513_v39 = vpop.f32.mrb[2].mxu0 }
  0xf8   :  { %v514_v40 = vpop.f32.mrb[3].mxu0 }
  0xf9   :  { %v212_v41 = vadd.f32 %v512_v38, %v459_v36 }
  0xfb   :  { %v217_v42 = vmax.f32 %v212_v41, 0.0 }
  0xfd   :  { %v218_v43 = vpack.c.bf16 %v217_v42, %v217_v42 }
  0xff   :  { %551 = vmatmul.mubr.bf16.vlgmr.msra.gmra.mrb[0].mxu1 %v218_v43 }
 0x1d2   :  { %v324_v47 = vpop.f32.mrb[0].mxu1 }
 0x1d3   :  { %v325_v48 = vadd.f32 %v476_v46, %v324_v47  ;;  %v552_v49 = vpop.f32.mrb[1].mxu1 }
 0x1d4   :  { %v327_v50 = vpop.f32.mrb[2].mxu1 }
 0x1d5   :  { %v330_v51 = vmax.f32 %v325_v48, 0.0  ;;  %v553_v52 = vpop.f32.mrb[3].mxu1 }
 0x1d7   :  { %v331_v53 = vpack.c.bf16 %v330_v51, %v330_v51 }
 0x1d9   :  { %571 = vmatmul.mubr.bf16.vlgmr.msra.gmra.mrb[4].mxu0 %v331_v53 }
 0x2ac   :  { %v437_v55 = vpop.f32.mrb[4].mxu0 }
 0x2ad   :  { %v438_v56 = vadd.f32 %v485_v54, %v437_v55  ;;  %v572_v57 = vpop.f32.mrb[5].mxu0 }
 0x2ae   :  { %v440_v58 = vpop.f32.mrb[6].mxu0 }
 0x2af   :  { %443 = vst [vmem:[#allocation2] sm:$0x3] %v438_v56  ;;  %v573_v59 = vpop.f32.mrb[7].mxu0 }
 0x2b0   :  { %620 = shalt.err (!%p617_p4)
}
 0x2b1   :  { %s621_s6 = scalar_lea.hbm %s821_s7, 32 }
 0x2b2   :  { %p622_p5 = scmp.ne.s32.totalorder %s821_s7, %s621_s6  ;;  %p625_p6 = scmp.lt.u32.totalorder %s621_s6, %s821_s7 }
 0x2b4   :  { %p627_p7 = pnand %p625_p6, %p622_p5 }
 0x2b6   :  { %630 = shalt.err (!%p627_p7)
}
 0x2b7   :  { %453 = dma.vmem_to_hbm [thread:$0]  %s451_s22, 32, %s821_s7, [#allocation3]  }
 0x2b8   :  { %631 = dma.done.wait [#allocation3], 32  }
 0x2b9   :  { %632 = vsyncadd [#allocation3], 4294967264 }
 0x2ba   :  { %457 = vsyncpa [#allocation3], 1 }

// kernel: fullyconneted_forward.2
= control target key start
LH: loop header
LB: loop body
LE: loop exit
PB: predicated region body
PF: predicated region fallthrough
CT: control target
= control target key end

     0   :  { %8 = vsyncpa [#allocation4], 0  ;;  %s459_s12 = smov [#allocation3]   ;;  %s536_s0 = inlined_call_operand.vmem [shape: bf16[2,768], index: 0, kind: input, shape index: {}]   ;;  %s537_s1 = inlined_call_operand.hbm [shape: s8[1,768,256], index: 1, kind: input, shape index: {}]   ;;  %s538_s2 = inlined_call_operand.vmem [shape: f32[2,256], index: 2, kind: input, shape index: {}]   ;;  %s539_s3 = inlined_call_operand.vmem [shape: f32[2,256], index: 3, kind: output, shape index: {}]  }
   0x1   :  { %s16_s13 = sshll.u32 %s459_s12, 4  ;;  %s435_s16 = scalar_lea.hbm %s537_s1, 6144  ;;  %s17_s13 = int_to_ptr.vmem [resolvable:$true] %s16_s13 }
   0x2   :  { %p436_p0 = scmp.ne.s32.totalorder %s537_s1, %s435_s16  ;;  %p439_p1 = scmp.lt.u32.totalorder %s435_s16, %s537_s1 }
   0x4   :  { %p441_p2 = pnand %p439_p1, %p436_p0 }
   0x6   :  { %444 = shalt.err (!%p441_p2)
}
   0x7   :  { %s445_s21 = scalar_lea.vmem %s17_s13, 6144  ;;  %p450_p4 = scmp.lt.s32.totalorder %s17_s13, %s17_s13 }
   0x8   :  { %p446_p3 = scmp.ne.s32.totalorder %s17_s13, %s445_s21  ;;  %p451_p5 = scmp.lt.s32.totalorder %s445_s21, %s445_s21 }
   0xa   :  { %p452_p6 = por %p451_p5, %p450_p4 }
   0xc   :  { %p453_p7 = pnand %p452_p6, %p446_p3 }
   0xe   :  { %456 = shalt.err (!%p453_p7)
}
   0xf   :  { %s460_s22 = smov 256   ;;  %s461_s23 = smov 16  }
  0x10   :  { %22 = dma.hbm_to_vmem [thread:$0]  %s537_s1, 6144, %s17_s13, [#allocation4], %s460_s22, %s460_s22, %s461_s23  }
  0x11   :  { %457 = dma.done.wait [#allocation4], 6144  }
  0x12   :  { %458 = vsyncadd [#allocation4], 4294961152  ;;  %v462_v0 = vmov 1966171168   ;;  %v184_v2 = vlaneseq  ;;  %v51_v3 = vld [vmem:[#allocation3 + $0x88] sm:$0xff]  ;;  %v50_v4 = vld [vmem:[#allocation3 + $0x80] sm:$0xff] }
  0x13   :  { %v182_v1 = vunpack.c.l.s4 %v462_v0  ;;  %v115_v5 = vunpack.c.l.s8.bf16 %v51_v3  ;;  %v117_v6 = vunpack.c.h.s8.bf16 %v51_v3  ;;  %v114_v7 = vunpack.c.l.s8.bf16 %v50_v4  ;;  %v53_v8 = vld [vmem:[#allocation3 + $0x98] sm:$0xff]  ;;  %v52_v13 = vld [vmem:[#allocation3 + $0x90] sm:$0xff]  ;;  %v35_v14 = vld [vmem:[#allocation3 + $0x8] sm:$0xff] }
  0x14   :  { %v497_v10 = vshrl.u32 %v184_v2, 7  ;;  %v116_v11 = vunpack.c.h.s8.bf16 %v50_v4  ;;  %v119_v12 = vunpack.c.l.s8.bf16 %v53_v8  ;;  %v34_v15 = vld [vmem:[#allocation3] sm:$0xff]  ;;  %v118_v18 = vunpack.c.l.s8.bf16 %v52_v13  ;;  %v37_v23 = vld [vmem:[#allocation3 + $0x18] sm:$0xff]  ;;  %v55_v24 = vld [vmem:[#allocation3 + $0xa8] sm:$0xff] }
  0x15   :  { %v183_v9 = vunpack.c.0.s8 %v182_v1  ;;  %274 = vmatprep.subr.bf16.mxu0 %v115_v5  ;;  %v33_v17 = vld [vmem:[%s536_s0] sm:$0x3f]  ;;  %v83_v19 = vunpack.c.l.s8.bf16 %v35_v14  ;;  %v121_v20 = vunpack.c.h.s8.bf16 %v53_v8  ;;  %v85_v21 = vunpack.c.h.s8.bf16 %v35_v14  ;;  %v36_v30 = vld [vmem:[#allocation3 + $0x10] sm:$0xff]  ;;  %v39_v39 = vld [vmem:[#allocation3 + $0x28] sm:$0xff] }
  0x16   :  { %275 = vmatpush1.bf16.msra.mxu0 %v114_v7  ;;  %v82_v22 = vunpack.c.l.s8.bf16 %v34_v15  ;;  %v84_v26 = vunpack.c.h.s8.bf16 %v34_v15  ;;  %v120_v27 = vunpack.c.h.s8.bf16 %v52_v13  ;;  %v87_v29 = vunpack.c.l.s8.bf16 %v37_v23  ;;  %v54_v32 = vld [vmem:[#allocation3 + $0xa0] sm:$0xff]  ;;  %v57_v40 = vld [vmem:[#allocation3 + $0xb8] sm:$0xff]  ;;  %v56_v46 = vld [vmem:[#allocation3 + $0xb0] sm:$0xff] }
  0x17   :  { %276 = vmatprep.subr.bf16.mxu0 %v117_v6  ;;  %v500_v16 = vsub.s32 %v183_v9, %v497_v10  ;;  %233 = vmatprep.subr.bf16.mxu1 %v83_v19  ;;  %v123_v31 = vunpack.c.l.s8.bf16 %v55_v24  ;;  %v86_v34 = vunpack.c.l.s8.bf16 %v36_v30  ;;  %v122_v35 = vunpack.c.l.s8.bf16 %v54_v32  ;;  %v38_v44 = vld [vmem:[#allocation3 + $0x20] sm:$0xff]  ;;  %v41_v52 = vld [vmem:[#allocation3 + $0x38] sm:$0xff]  ;;  %v59_v53 = vld [vmem:[#allocation3 + $0xc8] sm:$0xff] }
  0x18   :  { %234 = vmatpush1.bf16.msra.mxu1 %v82_v22  ;;  %v89_v37 = vunpack.c.h.s8.bf16 %v37_v23  ;;  %v125_v38 = vunpack.c.h.s8.bf16 %v55_v24  ;;  %v88_v41 = vunpack.c.h.s8.bf16 %v36_v30  ;;  %v124_v42 = vunpack.c.h.s8.bf16 %v54_v32  ;;  %v40_v58 = vld [vmem:[#allocation3 + $0x30] sm:$0xff]  ;;  %v58_v61 = vld [vmem:[#allocation3 + $0xc0] sm:$0xff]  ;;  %v43_v2 = vld [vmem:[#allocation3 + $0x48] sm:$0xff] }
  0x19   :  { %v506_v25 = vrot.slane %v33_v17, %v500_v16  ;;  %235 = vmatprep.subr.bf16.mxu1 %v85_v21  ;;  %v91_v43 = vunpack.c.l.s8.bf16 %v39_v39  ;;  %v127_v45 = vunpack.c.l.s8.bf16 %v57_v40  ;;  %v180_v47 = vcombine.high %v33_v17, %v33_v17  ;;  %v61_v3 = vld [vmem:[#allocation3 + $0xd8] sm:$0xff]  ;;  %v42_v7 = vld [vmem:[#allocation3 + $0x40] sm:$0xff]  ;;  %v60_v9 = vld [vmem:[#allocation3 + $0xd0] sm:$0xff] }
  0x1a   :  { %277 = vmatpush1.bf16.msra.mxu0 %v116_v11  ;;  %v90_v48 = vunpack.c.l.s8.bf16 %v38_v44  ;;  %v126_v49 = vunpack.c.l.s8.bf16 %v56_v46  ;;  %v93_v50 = vunpack.c.h.s8.bf16 %v39_v39  ;;  %v129_v51 = vunpack.c.h.s8.bf16 %v57_v40  ;;  %v45_v15 = vld [vmem:[#allocation3 + $0x58] sm:$0xff]  ;;  %v63_v17 = vld [vmem:[#allocation3 + $0xe8] sm:$0xff]  ;;  %v44_v21 = vld [vmem:[#allocation3 + $0x50] sm:$0xff] }
  0x1b   :  { %278 = vmatprep.subr.bf16.mxu0 %v119_v12  ;;  %v195_v28 = vcombine.high %v506_v25, %v506_v25  ;;  %v512_v54 = vrot.slane %v180_v47, %v500_v16  ;;  %v92_v55 = vunpack.c.h.s8.bf16 %v38_v44  ;;  %v128_v56 = vunpack.c.h.s8.bf16 %v56_v46  ;;  %v62_v23 = vld [vmem:[#allocation3 + $0xe0] sm:$0xff]  ;;  %v65_v30 = vld [vmem:[#allocation3 + $0xf8] sm:$0xff]  ;;  %v48_v47 = vld [vmem:[#allocation3 + $0x70] sm:$0xff] }
  0x1c   :  { %236 = vmatpush1.bf16.msra.mxu1 %v84_v26  ;;  %v95_v57 = vunpack.c.l.s8.bf16 %v41_v52  ;;  %v131_v60 = vunpack.c.l.s8.bf16 %v59_v53  ;;  %v94_v62 = vunpack.c.l.s8.bf16 %v40_v58  ;;  %v130_v63 = vunpack.c.l.s8.bf16 %v58_v61 }
  0x1d   :  { %v217_v33 = vrot.slane %v195_v28, %v500_v16  ;;  %237 = vmatprep.subr.bf16.mxu1 %v87_v29  ;;  %v210_v59 = vrot.slane %v512_v54, %v500_v16  ;;  %v97_v0 = vunpack.c.h.s8.bf16 %v41_v52  ;;  %v133_v1 = vunpack.c.h.s8.bf16 %v59_v53  ;;  %v47_v29 = vld [vmem:[#allocation3 + $0x68] sm:$0xff] }
  0x1e   :  { %279 = vmatpush1.bf16.msra.mxu0 %v118_v18  ;;  %v96_v4 = vunpack.c.h.s8.bf16 %v40_v58  ;;  %v132_v5 = vunpack.c.h.s8.bf16 %v58_v61  ;;  %v99_v6 = vunpack.c.l.s8.bf16 %v43_v2  ;;  %v135_v8 = vunpack.c.l.s8.bf16 %v61_v3 }
  0x1f   :  { %280 = vmatprep.subr.bf16.mxu0 %v121_v20  ;;  %v226_v36 = vcombine.high %v217_v33, %v217_v33  ;;  %265 = vmatprep.mubr.bf16.mxu1 %v217_v33  ;;  %v98_v11 = vunpack.c.l.s8.bf16 %v42_v7  ;;  %v134_v12 = vunpack.c.l.s8.bf16 %v60_v9  ;;  %v101_v13 = vunpack.c.h.s8.bf16 %v43_v2 }
  0x20   :  { %238 = vmatpush1.bf16.msra.mxu1 %v86_v34  ;;  %v137_v14 = vunpack.c.h.s8.bf16 %v61_v3  ;;  %v100_v18 = vunpack.c.h.s8.bf16 %v42_v7  ;;  %v136_v19 = vunpack.c.h.s8.bf16 %v60_v9  ;;  %v103_v20 = vunpack.c.l.s8.bf16 %v45_v15  ;;  %v46_v34 = vld [vmem:[#allocation3 + $0x60] sm:$0xff]  ;;  %v73_v7 = vld [vmem:[#allocation3 + $0x138] sm:$0xff] }
  0x21   :  { %306 = vmatprep.mubr.bf16.mxu0 %v226_v36  ;;  %239 = vmatprep.subr.bf16.mxu1 %v89_v37  ;;  %v139_v22 = vunpack.c.l.s8.bf16 %v63_v17  ;;  %v102_v24 = vunpack.c.l.s8.bf16 %v44_v21  ;;  %v138_v26 = vunpack.c.l.s8.bf16 %v62_v23  ;;  %v141_v28 = vunpack.c.h.s8.bf16 %v63_v17  ;;  %v64_v36 = vld [vmem:[#allocation3 + $0xf0] sm:$0xff] }
  0x22   :  { %281 = vmatpush1.bf16.msra.mxu0 %v120_v27  ;;  %v105_v27 = vunpack.c.h.s8.bf16 %v45_v15  ;;  %v140_v32 = vunpack.c.h.s8.bf16 %v62_v23  ;;  %v107_v33 = vunpack.c.l.s8.bf16 %v47_v29  ;;  %v106_v37 = vunpack.c.l.s8.bf16 %v46_v34 }
  0x23   :  { %282 = vmatprep.subr.bf16.mxu0 %v123_v31  ;;  %v104_v31 = vunpack.c.h.s8.bf16 %v44_v21  ;;  %v109_v39 = vunpack.c.h.s8.bf16 %v47_v29  ;;  %v145_v40 = vunpack.c.h.s8.bf16 %v65_v30  ;;  %v108_v44 = vunpack.c.h.s8.bf16 %v46_v34  ;;  %v77_v21 = vld [vmem:[#allocation3 + $0x158] sm:$0xff] }
  0x24   :  { %240 = vmatpush1.bf16.msra.mxu1 %v88_v41  ;;  %v49_v41 = vld [vmem:[#allocation3 + $0x78] sm:$0xff]  ;;  %v110_v52 = vunpack.c.l.s8.bf16 %v48_v47  ;;  %v112_v58 = vunpack.c.h.s8.bf16 %v48_v47  ;;  %v159_v9 = vunpack.c.l.s8.bf16 %v73_v7  ;;  %v167_v23 = vunpack.c.l.s8.bf16 %v77_v21 }
  0x25   :  { %241 = vmatprep.subr.bf16.mxu1 %v91_v43  ;;  %v203_v43 = vrot.slane %v506_v25, %v500_v16  ;;  %v111_v46 = vunpack.c.l.s8.bf16 %v49_v41  ;;  %v113_v25 = vunpack.c.h.s8.bf16 %v49_v41  ;;  %v81_v34 = vld [vmem:[#allocation3 + $0x178] sm:$0xff]  ;;  %v463_v41 = vmov 0.0  }
  0x26   :  { %283 = vmatpush1.bf16.msra.mxu0 %v122_v35  ;;  %v143_v35 = vunpack.c.l.s8.bf16 %v65_v30  ;;  %32 = vst [vmem:[#allocation2] sm:$0xf] %v463_v41 }
  0x27   :  { %284 = vmatprep.subr.bf16.mxu0 %v125_v38  ;;  %v142_v38 = vunpack.c.l.s8.bf16 %v64_v36 }
  0x28   :  { %242 = vmatpush1.bf16.msra.mxu1 %v90_v48 }
  0x29   :  { %243 = vmatprep.subr.bf16.mxu1 %v93_v50  ;;  %v196_v50 = vcombine.high %v512_v54, %v512_v54 }
  0x2a   :  { %285 = vmatpush1.bf16.msra.mxu0 %v124_v42  ;;  %v67_v42 = vld [vmem:[#allocation3 + $0x108] sm:$0xff] }
  0x2b   :  { %286 = vmatprep.subr.bf16.mxu0 %v127_v45  ;;  %v144_v45 = vunpack.c.h.s8.bf16 %v64_v36  ;;  %v147_v48 = vunpack.c.l.s8.bf16 %v67_v42  ;;  %v175_v36 = vunpack.c.l.s8.bf16 %v81_v34 }
  0x2c   :  { %244 = vmatpush1.bf16.msra.mxu1 %v92_v55  ;;  %v149_v55 = vunpack.c.h.s8.bf16 %v67_v42 }
  0x2d   :  { %245 = vmatprep.subr.bf16.mxu1 %v95_v57  ;;  %v69_v57 = vld [vmem:[#allocation3 + $0x118] sm:$0xff] }
  0x2e   :  { %287 = vmatpush1.bf16.msra.mxu0 %v126_v49  ;;  %v66_v49 = vld [vmem:[#allocation3 + $0x100] sm:$0xff]  ;;  %v151_v61 = vunpack.c.l.s8.bf16 %v69_v57 }
  0x2f   :  { %288 = vmatprep.subr.bf16.mxu0 %v129_v51  ;;  %v225_v51 = vcombine.high %v203_v43, %v203_v43  ;;  %v146_v53 = vunpack.c.l.s8.bf16 %v66_v49 }
  0x30   :  { %246 = vmatpush1.bf16.msra.mxu1 %v94_v62  ;;  %v68_v62 = vld [vmem:[#allocation3 + $0x110] sm:$0xff] }
  0x31   :  { %247 = vmatprep.subr.bf16.mxu1 %v97_v0  ;;  %v153_v0 = vunpack.c.h.s8.bf16 %v69_v57  ;;  %v152_v2 = vunpack.c.h.s8.bf16 %v68_v62  ;;  %v178_v57 = vld [vmem:[#allocation2] sm:$0xf] }
  0x32   :  { %289 = vmatpush1.bf16.msra.mxu0 %v128_v56  ;;  %v224_v56 = vrot.slane %v196_v50, %v500_v16  ;;  %v381_v16 = vsub.s32 1, %v497_v10 }
  0x33   :  { %290 = vmatprep.subr.bf16.mxu0 %v131_v60  ;;  %v148_v60 = vunpack.c.h.s8.bf16 %v66_v49 }
  0x34   :  { %248 = vmatpush1.bf16.msra.mxu1 %v96_v4  ;;  %v70_v4 = vld [vmem:[#allocation3 + $0x120] sm:$0xff] }
  0x35   :  { %249 = vmatprep.subr.bf16.mxu1 %v99_v6 }
  0x36   :  { %291 = vmatpush1.bf16.msra.mxu0 %v130_v63  ;;  %v150_v63 = vunpack.c.l.s8.bf16 %v68_v62 }
  0x37   :  { %292 = vmatprep.subr.bf16.mxu0 %v133_v1  ;;  %v71_v1 = vld [vmem:[#allocation3 + $0x128] sm:$0xff] }
  0x38   :  { %250 = vmatpush1.bf16.msra.mxu1 %v98_v11  ;;  %v155_v3 = vunpack.c.l.s8.bf16 %v71_v1  ;;  %v157_v6 = vunpack.c.h.s8.bf16 %v71_v1  ;;  %v72_v11 = vld [vmem:[#allocation3 + $0x130] sm:$0xff] }
  0x39   :  { %251 = vmatprep.subr.bf16.mxu1 %v101_v13  ;;  %v161_v13 = vunpack.c.h.s8.bf16 %v73_v7  ;;  %v160_v15 = vunpack.c.h.s8.bf16 %v72_v11 }
  0x3a   :  { %293 = vmatpush1.bf16.msra.mxu0 %v132_v5  ;;  %v154_v5 = vunpack.c.l.s8.bf16 %v70_v4 }
  0x3b   :  { %294 = vmatprep.subr.bf16.mxu0 %v135_v8  ;;  %v156_v8 = vunpack.c.h.s8.bf16 %v70_v4 }
  0x3c   :  { %252 = vmatpush1.bf16.msra.mxu1 %v100_v18  ;;  %v74_v18 = vld [vmem:[#allocation3 + $0x140] sm:$0xff] }
  0x3d   :  { %253 = vmatprep.subr.bf16.mxu1 %v103_v20 }
  0x3e   :  { %295 = vmatpush1.bf16.msra.mxu0 %v134_v12  ;;  %v158_v12 = vunpack.c.l.s8.bf16 %v72_v11 }
  0x3f   :  { %296 = vmatprep.subr.bf16.mxu0 %v137_v14  ;;  %v75_v14 = vld [vmem:[#allocation3 + $0x148] sm:$0xff] }
  0x40   :  { %254 = vmatpush1.bf16.msra.mxu1 %v102_v24  ;;  %v163_v17 = vunpack.c.l.s8.bf16 %v75_v14  ;;  %v165_v20 = vunpack.c.h.s8.bf16 %v75_v14  ;;  %v76_v24 = vld [vmem:[#allocation3 + $0x150] sm:$0xff] }
  0x41   :  { %255 = vmatprep.subr.bf16.mxu1 %v105_v27  ;;  %v169_v27 = vunpack.c.h.s8.bf16 %v77_v21  ;;  %v168_v29 = vunpack.c.h.s8.bf16 %v76_v24 }
  0x42   :  { %297 = vmatpush1.bf16.msra.mxu0 %v136_v19  ;;  %v162_v19 = vunpack.c.l.s8.bf16 %v74_v18 }
  0x43   :  { %298 = vmatprep.subr.bf16.mxu0 %v139_v22  ;;  %v164_v22 = vunpack.c.h.s8.bf16 %v74_v18 }
  0x44   :  { %256 = vmatpush1.bf16.msra.mxu1 %v104_v31  ;;  %v78_v31 = vld [vmem:[#allocation3 + $0x160] sm:$0xff] }
  0x45   :  { %257 = vmatprep.subr.bf16.mxu1 %v107_v33 }
  0x46   :  { %299 = vmatpush1.bf16.msra.mxu0 %v138_v26  ;;  %v166_v26 = vunpack.c.l.s8.bf16 %v76_v24 }
  0x47   :  { %300 = vmatprep.subr.bf16.mxu0 %v141_v28  ;;  %v79_v28 = vld [vmem:[#allocation3 + $0x168] sm:$0xff] }
  0x48   :  { %258 = vmatpush1.bf16.msra.mxu1 %v106_v37  ;;  %v171_v30 = vunpack.c.l.s8.bf16 %v79_v28  ;;  %v173_v33 = vunpack.c.h.s8.bf16 %v79_v28  ;;  %v80_v37 = vld [vmem:[#allocation3 + $0x170] sm:$0xff] }
  0x49   :  { %259 = vmatprep.subr.bf16.mxu1 %v109_v39  ;;  %v177_v39 = vunpack.c.h.s8.bf16 %v81_v34 }
  0x4a   :  { %301 = vmatpush1.bf16.msra.mxu0 %v140_v32  ;;  %v170_v32 = vunpack.c.l.s8.bf16 %v78_v31 }
  0x4b   :  { %302 = vmatprep.subr.bf16.mxu0 %v143_v35  ;;  %v172_v35 = vunpack.c.h.s8.bf16 %v78_v31 }
  0x4c   :  { %260 = vmatpush1.bf16.msra.mxu1 %v108_v44 }
  0x4d   :  { %261 = vmatprep.subr.bf16.mxu1 %v111_v46  ;;  %v464_v46 = vmov 1983009808  }
  0x4e   :  { %303 = vmatpush1.bf16.msra.mxu0 %v142_v38  ;;  %v174_v38 = vunpack.c.l.s8.bf16 %v80_v37  ;;  %v360_v47 = vunpack.c.l.s4 %v464_v46 }
  0x4f   :  { %304 = vmatprep.subr.bf16.mxu0 %v145_v40  ;;  %v176_v40 = vunpack.c.h.s8.bf16 %v80_v37 }
  0x50   :  { %262 = vmatpush1.bf16.msra.mxu1 %v110_v52 }
  0x51   :  { %263 = vmatprep.subr.bf16.mxu1 %v113_v25  ;;  %v377_v25 = vsub.s32 0, %v497_v10 }
  0x52   :  { %305 = vmatpush1.bf16.msra.mxu0 %v144_v45 }
  0x53   :  { %315 = vmatprep.subr.bf16.mxu0 %v147_v48  ;;  %v361_v48 = vunpack.c.0.s8 %v360_v47 }
  0x54   :  { %264 = vmatpush1.bf16.msra.mxu1 %v112_v58  ;;  %v421_v58 = vld [vmem:[%s538_s2 + $0x1] ss:$2 sm:$0x3] }
  0x55   :  { %307 = vmatmul.mubr.bf16.vlgmr.msra.gmra.mrb[0].mxu0 %v225_v51  ;;  %v403_v1 = vrot.slane %v421_v58, %v381_v16 }
  0x56   :  { %316 = vmatpush1.bf16.msra.mxu0 %v146_v53  ;;  %347 = vmatprep.mubr.bf16.mxu0 %v224_v56  ;;  %v364_v53 = vsub.s32 %v361_v48, %v497_v10 }
  0x57   :  { %317 = vmatprep.subr.bf16.mxu0 %v149_v55  ;;  %266 = vmatmul.mubr.bf16.vlgmr.msra.gmra.mrb[0].mxu1 %v203_v43 }
  0x5a   :  { %318 = vmatpush1.bf16.msra.mxu0 %v148_v60 }
  0x5b   :  { %319 = vmatprep.subr.bf16.mxu0 %v151_v61 }
  0x5e   :  { %320 = vmatpush1.bf16.msra.mxu0 %v150_v63 }
  0x5f   :  { %321 = vmatprep.subr.bf16.mxu0 %v153_v0  ;;  %v399_v0 = vrot.slane %v421_v58, %v377_v25 }
  0x62   :  { %322 = vmatpush1.bf16.msra.mxu0 %v152_v2  ;;  %v404_v2 = vcombine.low %v399_v0, %v403_v1 }
  0x63   :  { %323 = vmatprep.subr.bf16.mxu0 %v155_v3 }
  0x64   :  { %v411_v4 = vrot.slane %v404_v2, %v364_v53 }
  0x66   :  { %324 = vmatpush1.bf16.msra.mxu0 %v154_v5 }
  0x67   :  { %325 = vmatprep.subr.bf16.mxu0 %v157_v6 }
  0x6a   :  { %326 = vmatpush1.bf16.msra.mxu0 %v156_v8 }
  0x6b   :  { %327 = vmatprep.subr.bf16.mxu0 %v159_v9 }
  0x6e   :  { %328 = vmatpush1.bf16.msra.mxu0 %v158_v12 }
  0x6f   :  { %329 = vmatprep.subr.bf16.mxu0 %v161_v13 }
  0x72   :  { %330 = vmatpush1.bf16.msra.mxu0 %v160_v15 }
  0x73   :  { %331 = vmatprep.subr.bf16.mxu0 %v163_v17 }
  0x76   :  { %332 = vmatpush1.bf16.msra.mxu0 %v162_v19 }
  0x77   :  { %333 = vmatprep.subr.bf16.mxu0 %v165_v20 }
  0x7a   :  { %334 = vmatpush1.bf16.msra.mxu0 %v164_v22 }
  0x7b   :  { %335 = vmatprep.subr.bf16.mxu0 %v167_v23 }
  0x7e   :  { %336 = vmatpush1.bf16.msra.mxu0 %v166_v26 }
  0x7f   :  { %337 = vmatprep.subr.bf16.mxu0 %v169_v27 }
  0x82   :  { %338 = vmatpush1.bf16.msra.mxu0 %v168_v29 }
  0x83   :  { %339 = vmatprep.subr.bf16.mxu0 %v171_v30 }
  0x86   :  { %340 = vmatpush1.bf16.msra.mxu0 %v170_v32 }
  0x87   :  { %341 = vmatprep.subr.bf16.mxu0 %v173_v33 }
  0x8a   :  { %342 = vmatpush1.bf16.msra.mxu0 %v172_v35 }
  0x8b   :  { %343 = vmatprep.subr.bf16.mxu0 %v175_v36 }
  0x8e   :  { %344 = vmatpush1.bf16.msra.mxu0 %v174_v38 }
  0x8f   :  { %345 = vmatprep.subr.bf16.mxu0 %v177_v39 }
  0x92   :  { %346 = vmatpush1.bf16.msra.mxu0 %v176_v40 }
  0x95   :  { %348 = vmatmul.mubr.bf16.vlgmr.msra.gmra.mrb[0].mxu0 %v210_v59  ;;  %v373_v59 = vld [vmem:[%s538_s2] ss:$2 sm:$0x3] }
  0x96   :  { %v378_v61 = vrot.slane %v373_v59, %v377_v25  ;;  %v382_v62 = vrot.slane %v373_v59, %v381_v16 }
  0x98   :  { %v383_v10 = vcombine.low %v378_v61, %v382_v62 }
  0x9a   :  { %v390_v3 = vrot.slane %v383_v10, %v364_v53 }
 0x12a   :  { %v267_v42 = vpop.f32.mrb[0].mxu1 }
 0x12b   :  { %v269_v43 = vpop.f32.mrb[1].mxu1 }
 0x12c   :  { %v271_v44 = vpop.f32.mrb[2].mxu1 }
 0x12d   :  { %v272_v45 = vpop.f32.mrb[3].mxu1 }
 0x168   :  { %v349_v49 = vpop.f32.mrb[0].mxu0 }
 0x169   :  { %v422_v50 = vadd.f32 %v349_v49, %v267_v42  ;;  %v351_v51 = vpop.f32.mrb[1].mxu0 }
 0x16a   :  { %v423_v52 = vadd.f32 %v351_v51, %v269_v43  ;;  %v353_v54 = vpop.f32.mrb[2].mxu0 }
 0x16b   :  { %v354_v55 = vpop.f32.mrb[3].mxu0 }
 0x16c   :  { %v358_v56 = vcombine.low %v422_v50, %v423_v52 }
 0x16e   :  { %v365_v60 = vrot.slane %v358_v56, %v364_v53 }
 0x170   :  { %v367_v63 = vadd.f32 %v365_v60, %v178_v57 }
 0x172   :  { %368 = vst [vmem:[#allocation2] sm:$0xf] %v367_v63 }
 0x179   :  { %v372_v5 = vld [vmem:[#allocation2] sm:$0xf] }
 0x17a   :  { %v392_v6 = vmul.f32 %v390_v3, %v372_v5 }
 0x17c   :  { %v413_v7 = vadd.f32 %v411_v4, %v392_v6 }
 0x17e   :  { %v414_v8 = vmax.f32 %v413_v7, 0.0 }
 0x180   :  { %415 = vst [vmem:[%s539_s3] sm:$0xf] %v414_v8 }
 0x181   :  { %420 = vsyncpa [#allocation4], 1 }

</bundles_post_ra>
